<compile_context>
chip_gen: v6e
topology: v6e:2x2x1
jax: 0.10.0
libtpu: 0.0.40
codegen_flags: <defaults>
</compile_context>

<pallas_src>
import jax
import jax.numpy as jnp
from jax.experimental import pallas as pl
from jax.experimental.pallas import tpu as pltpu


def _compact_tiles_kernel(keep_ref, edge_ref, out_ref):
    """Compact G independent edge tiles of TE lanes each (kept edges to the front).

    keep_ref: VMEM (G, TE)    int32  1 = keep, 0 = drop (padded lanes are 0)
    edge_ref: VMEM (2, G, TE) int32  edge tiles (row 0 = src, row 1 = dst)
    out_ref : VMEM (2, G, TE) int32  per-tile compacted edges, -1 padded
    """
    g, te = keep_ref.shape
    lane = jax.lax.broadcasted_iota(jnp.int32, (g, te), 1)

    keep = keep_ref[...]

    # Inclusive prefix-sum of `keep` along lanes: log2(TE) masked circular rolls
    # (XLU) instead of a (TE, TE) triangular MXU matmul.
    psum = keep
    step = 1
    while step < te:
        shifted = pltpu.roll(psum, shift=step, axis=1)
        psum = psum + jnp.where(lane >= step, shifted, 0)
        step *= 2

    # Total left-shift per element = number of dropped elements at or before it.
    # Kept elements have shift <= lane, so bits 0..log2(TE)-1 suffice.
    shift = (lane + 1) - psum            # (G, TE)
    valid = keep                         # (G, TE) 0/1

    src = edge_ref[0]                    # (G, TE)
    dst = edge_ref[1]                    # (G, TE)

    # Butterfly compaction (destination-pull): at bit b, elements whose shift has
    # bit b set move left by 2^b.  Shifts are monotone non-decreasing along the
    # lane, so a live element is never overwritten by another live element.
    step = 1
    bit = 0
    while step < te:
        back = te - step                                    # roll so result[j] = x[j + step]
        move = valid * ((shift >> bit) & 1)                 # (G, TE) 0/1
        inc = (pltpu.roll(move, shift=back, axis=1) == 1) & (lane < te - step)
        src = jnp.where(inc, pltpu.roll(src, shift=back, axis=1), src)
        dst = jnp.where(inc, pltpu.roll(dst, shift=back, axis=1), dst)
        new_shift = jnp.where(inc, pltpu.roll(shift, shift=back, axis=1), shift)
        valid = jnp.where(inc, 1, valid * (1 - move))       # vacated slots die
        shift = new_shift
        step *= 2
        bit += 1

    cnt = psum[:, te - 1:te]                                # (G, 1) kept per tile
    live = lane < cnt
    out_ref[0] = jnp.where(live, src, -1)
    out_ref[1] = jnp.where(live, dst, -1)


def shuffling(x, y, edge_index, key, *, p=0.05, tile_e=256, tiles_per_step=8):
    """JAX/Pallas equivalent of Shuffling.forward.

    Returns x, y untouched, edge_index as a [2, E] int32 buffer with kept edges
    compacted to the front (-1 elsewhere), and num_edges = number kept.
    Pass a fresh `key` per call to mirror PyTorch's per-call uniform draw.
    """
    # TODO(synk): torch_geometric's Data container has no JAX equivalent; a dict
    # with a static-shape edge buffer + count is returned instead.
    E = int(edge_index.shape[1])
    if E == 0:
        return {"x": x, "y": y,
                "edge_index": jnp.zeros((2, 0), jnp.int32),
                "num_edges": jnp.zeros((), jnp.int32)}

    assert tile_e % 128 == 0 and (tile_e & (tile_e - 1)) == 0, \
        "tile_e must be a lane-dense power of two"
    assert tiles_per_step % 8 == 0, "tiles_per_step must be a multiple of 8 (sublanes)"

    num_tiles = (E + tile_e - 1) // tile_e
    tiles_rounded = ((num_tiles + 7) // 8) * 8              # sublane-aligned
    g = min(tiles_per_step, tiles_rounded)                  # tiles per grid step
    num_steps = (num_tiles + g - 1) // g
    t_pad = num_steps * g
    e_pad = t_pad * tile_e

    # Fresh uniforms every call (mirrors torch.empty(E).uniform_()).  The keep
    # mask and per-tile counts/starts are tiny and computed once here in XLA.
    u = jax.random.uniform(key, (E,), dtype=jnp.float32)
    keep = (u >= p).astype(jnp.int32)
    keep_tiles = (jnp.zeros((e_pad,), jnp.int32).at[:E].set(keep)
                  .reshape(t_pad, tile_e))
    edge_tiles = (jnp.full((2, e_pad), -1, jnp.int32)
                  .at[:, :E].set(edge_index.astype(jnp.int32))
                  .reshape(2, t_pad, tile_e))

    blocks = pl.pallas_call(
        _compact_tiles_kernel,
        out_shape=jax.ShapeDtypeStruct((2, t_pad, tile_e), jnp.int32),
        grid=(num_steps,),
        in_specs=[
            pl.BlockSpec((g, tile_e), lambda s: (s, 0)),        # keep tiles
            pl.BlockSpec((2, g, tile_e), lambda s: (0, s, 0)),  # edge tiles
        ],
        out_specs=pl.BlockSpec((2, g, tile_e), lambda s: (0, s, 0)),
        compiler_params=pltpu.CompilerParams(
            dimension_semantics=("parallel",)),                 # steps independent
    )(keep_tiles, edge_tiles)

    counts = jnp.sum(keep_tiles, axis=1)                                    # (T,)
    starts = jnp.concatenate(
        [jnp.zeros((1,), jnp.int32), jnp.cumsum(counts, dtype=jnp.int32)[:-1]])
    total = jnp.sum(counts)

    # Cross-tile stitch: ordered dynamic_update_slice writes (tile t at starts[t]);
    # later tiles overwrite the previous tile's -1 tail, so the result is globally
    # compacted and -1-padded.  No XLA scatter.
    def body(t, buf):
        blk = jax.lax.dynamic_slice(blocks, (0, t, 0), (2, 1, tile_e))
        blk = blk.reshape(2, tile_e)
        return jax.lax.dynamic_update_slice(buf, blk, (0, starts[t]))

    out_buf = jax.lax.fori_loop(0, t_pad, body,
                                jnp.full((2, e_pad), -1, jnp.int32))
    out_edges = out_buf[:, :E]

    return {"x": x, "y": y, "edge_index": out_edges, "num_edges": total}


if __name__ == "__main__":
    import numpy as np

    root = jax.random.PRNGKey(0)
    k_x, k_e, k_drop1, k_drop2 = jax.random.split(root, 4)

    num_nodes, feat = 16, 32
    x = jax.random.normal(k_x, (num_nodes, feat), dtype=jnp.float32)
    y = jnp.int32(1)

    def check(E, key, p=0.05):
        k_edges, _ = jax.random.split(key)
        edge_index = jax.random.randint(k_edges, (2, E), 0, num_nodes, dtype=jnp.int32)

        out = shuffling(x, y, edge_index, key, p=p)
        jax.block_until_ready(out["edge_index"])
        jax.block_until_ready(out["num_edges"])

        # Reference: identical uniforms to the wrapper's draw (same key/shape/dtype).
        u_ref = jax.random.uniform(key, (E,), dtype=jnp.float32)
        keep_ref = np.asarray(u_ref >= p)
        expected = np.asarray(edge_index)[:, keep_ref]

        n_kept = int(out["num_edges"])
        ei = np.asarray(out["edge_index"])
        assert ei.shape == (2, E)
        assert n_kept == expected.shape[1]
        assert (ei[:, :n_kept] == expected).all()    # kept edges, original order
        assert (ei[:, n_kept:] == -1).all()          # dropped slots padded with -1
        assert out["x"].shape == (num_nodes, feat)

    check(1000, k_drop1)   # single grid step, E not a multiple of 128
    check(5000, k_drop2)   # multiple grid steps (G=8 tiles per step)

    print("KERNEL_OK")
</pallas_src>

<mosaic_0001>
module attributes {stable_mosaic.version = 11 : i64} {
  func.func @_compact_tiles_kernel(%arg0: i32, %arg1: memref<8x256xi32, #tpu.memory_space<vmem>>, %arg2: memref<2x8x256xi32, #tpu.memory_space<vmem>>, %arg3: memref<2x8x256xi32, #tpu.memory_space<vmem>>) attributes {dimension_semantics = [#tpu.dimension_semantics<parallel>], iteration_bounds = array<i64: 1>, scalar_prefetch = 0 : i64, scratch_operands = 0 : i64, tpu.core_type = #tpu.core_type<tc>, window_params = [{transform_indices = @transform_0, window_bounds = array<i64: 8, 256>}, {transform_indices = @transform_1, window_bounds = array<i64: 2, 8, 256>}, {transform_indices = @transform_2, window_bounds = array<i64: 2, 8, 256>}]} {
    %0 = tpu.iota {dimensions = array<i32: 1>} : vector<8x256xi32>
    %c0 = arith.constant 0 : index
    %c0_0 = arith.constant 0 : index
    %1 = vector.load %arg1[%c0, %c0_0] : memref<8x256xi32, #tpu.memory_space<vmem>>, vector<8x256xi32>
    %c1_i32 = arith.constant 1 : i32
    %2 = tpu.dynamic_rotate %1 by %c1_i32 dim 1 : vector<8x256xi32>, i32 -> vector<8x256xi32>
    %c1_i32_1 = arith.constant 1 : i32
    %3 = vector.broadcast %c1_i32_1 : i32 to vector<8x256xi32>
    %4 = arith.cmpi sge, %0, %3 : vector<8x256xi32>
    %c0_i32 = arith.constant 0 : i32
    %5 = vector.broadcast %c0_i32 : i32 to vector<8x256xi32>
    %6 = arith.select %4, %2, %5 : vector<8x256xi1>, vector<8x256xi32>
    %7 = arith.addi %1, %6 : vector<8x256xi32>
    %c2_i32 = arith.constant 2 : i32
    %8 = tpu.dynamic_rotate %7 by %c2_i32 dim 1 : vector<8x256xi32>, i32 -> vector<8x256xi32>
    %c2_i32_2 = arith.constant 2 : i32
    %9 = vector.broadcast %c2_i32_2 : i32 to vector<8x256xi32>
    %10 = arith.cmpi sge, %0, %9 : vector<8x256xi32>
    %c0_i32_3 = arith.constant 0 : i32
    %11 = vector.broadcast %c0_i32_3 : i32 to vector<8x256xi32>
    %12 = arith.select %10, %8, %11 : vector<8x256xi1>, vector<8x256xi32>
    %13 = arith.addi %7, %12 : vector<8x256xi32>
    %c4_i32 = arith.constant 4 : i32
    %14 = tpu.dynamic_rotate %13 by %c4_i32 dim 1 : vector<8x256xi32>, i32 -> vector<8x256xi32>
    %c4_i32_4 = arith.constant 4 : i32
    %15 = vector.broadcast %c4_i32_4 : i32 to vector<8x256xi32>
    %16 = arith.cmpi sge, %0, %15 : vector<8x256xi32>
    %c0_i32_5 = arith.constant 0 : i32
    %17 = vector.broadcast %c0_i32_5 : i32 to vector<8x256xi32>
    %18 = arith.select %16, %14, %17 : vector<8x256xi1>, vector<8x256xi32>
    %19 = arith.addi %13, %18 : vector<8x256xi32>
    %c8_i32 = arith.constant 8 : i32
    %20 = tpu.dynamic_rotate %19 by %c8_i32 dim 1 : vector<8x256xi32>, i32 -> vector<8x256xi32>
    %c8_i32_6 = arith.constant 8 : i32
    %21 = vector.broadcast %c8_i32_6 : i32 to vector<8x256xi32>
    %22 = arith.cmpi sge, %0, %21 : vector<8x256xi32>
    %c0_i32_7 = arith.constant 0 : i32
    %23 = vector.broadcast %c0_i32_7 : i32 to vector<8x256xi32>
    %24 = arith.select %22, %20, %23 : vector<8x256xi1>, vector<8x256xi32>
    %25 = arith.addi %19, %24 : vector<8x256xi32>
    %c16_i32 = arith.constant 16 : i32
    %26 = tpu.dynamic_rotate %25 by %c16_i32 dim 1 : vector<8x256xi32>, i32 -> vector<8x256xi32>
    %c16_i32_8 = arith.constant 16 : i32
    %27 = vector.broadcast %c16_i32_8 : i32 to vector<8x256xi32>
    %28 = arith.cmpi sge, %0, %27 : vector<8x256xi32>
    %c0_i32_9 = arith.constant 0 : i32
    %29 = vector.broadcast %c0_i32_9 : i32 to vector<8x256xi32>
    %30 = arith.select %28, %26, %29 : vector<8x256xi1>, vector<8x256xi32>
    %31 = arith.addi %25, %30 : vector<8x256xi32>
    %c32_i32 = arith.constant 32 : i32
    %32 = tpu.dynamic_rotate %31 by %c32_i32 dim 1 : vector<8x256xi32>, i32 -> vector<8x256xi32>
    %c32_i32_10 = arith.constant 32 : i32
    %33 = vector.broadcast %c32_i32_10 : i32 to vector<8x256xi32>
    %34 = arith.cmpi sge, %0, %33 : vector<8x256xi32>
    %c0_i32_11 = arith.constant 0 : i32
    %35 = vector.broadcast %c0_i32_11 : i32 to vector<8x256xi32>
    %36 = arith.select %34, %32, %35 : vector<8x256xi1>, vector<8x256xi32>
    %37 = arith.addi %31, %36 : vector<8x256xi32>
    %c64_i32 = arith.constant 64 : i32
    %38 = tpu.dynamic_rotate %37 by %c64_i32 dim 1 : vector<8x256xi32>, i32 -> vector<8x256xi32>
    %c64_i32_12 = arith.constant 64 : i32
    %39 = vector.broadcast %c64_i32_12 : i32 to vector<8x256xi32>
    %40 = arith.cmpi sge, %0, %39 : vector<8x256xi32>
    %c0_i32_13 = arith.constant 0 : i32
    %41 = vector.broadcast %c0_i32_13 : i32 to vector<8x256xi32>
    %42 = arith.select %40, %38, %41 : vector<8x256xi1>, vector<8x256xi32>
    %43 = arith.addi %37, %42 : vector<8x256xi32>
    %c128_i32 = arith.constant 128 : i32
    %44 = tpu.dynamic_rotate %43 by %c128_i32 dim 1 : vector<8x256xi32>, i32 -> vector<8x256xi32>
    %c128_i32_14 = arith.constant 128 : i32
    %45 = vector.broadcast %c128_i32_14 : i32 to vector<8x256xi32>
    %46 = arith.cmpi sge, %0, %45 : vector<8x256xi32>
    %c0_i32_15 = arith.constant 0 : i32
    %47 = vector.broadcast %c0_i32_15 : i32 to vector<8x256xi32>
    %48 = arith.select %46, %44, %47 : vector<8x256xi1>, vector<8x256xi32>
    %49 = arith.addi %43, %48 : vector<8x256xi32>
    %c1_i32_16 = arith.constant 1 : i32
    %50 = vector.broadcast %c1_i32_16 : i32 to vector<8x256xi32>
    %51 = arith.addi %0, %50 : vector<8x256xi32>
    %52 = arith.subi %51, %49 : vector<8x256xi32>
    %c0_17 = arith.constant 0 : index
    %c0_18 = arith.constant 0 : index
    %c0_19 = arith.constant 0 : index
    %53 = vector.load %arg2[%c0_17, %c0_18, %c0_19] : memref<2x8x256xi32, #tpu.memory_space<vmem>>, vector<1x8x256xi32>
    %54 = vector.shape_cast %53 : vector<1x8x256xi32> to vector<8x256xi32>
    %c1 = arith.constant 1 : index
    %c0_20 = arith.constant 0 : index
    %c0_21 = arith.constant 0 : index
    %55 = vector.load %arg2[%c1, %c0_20, %c0_21] : memref<2x8x256xi32, #tpu.memory_space<vmem>>, vector<1x8x256xi32>
    %56 = vector.shape_cast %55 : vector<1x8x256xi32> to vector<8x256xi32>
    %c0_i32_22 = arith.constant 0 : i32
    %57 = vector.broadcast %c0_i32_22 : i32 to vector<8x256xi32>
    %58 = arith.shrsi %52, %57 : vector<8x256xi32>
    %c1_i32_23 = arith.constant 1 : i32
    %59 = vector.broadcast %c1_i32_23 : i32 to vector<8x256xi32>
    %60 = arith.andi %58, %59 : vector<8x256xi32>
    %61 = arith.muli %1, %60 : vector<8x256xi32>
    %c255_i32 = arith.constant 255 : i32
    %62 = tpu.dynamic_rotate %61 by %c255_i32 dim 1 : vector<8x256xi32>, i32 -> vector<8x256xi32>
    %c1_i32_24 = arith.constant 1 : i32
    %63 = vector.broadcast %c1_i32_24 : i32 to vector<8x256xi32>
    %64 = arith.cmpi eq, %62, %63 : vector<8x256xi32>
    %c255_i32_25 = arith.constant 255 : i32
    %65 = vector.broadcast %c255_i32_25 : i32 to vector<8x256xi32>
    %66 = arith.cmpi slt, %0, %65 : vector<8x256xi32>
    %67 = arith.andi %64, %66 : vector<8x256xi1>
    %c255_i32_26 = arith.constant 255 : i32
    %68 = tpu.dynamic_rotate %54 by %c255_i32_26 dim 1 : vector<8x256xi32>, i32 -> vector<8x256xi32>
    %69 = arith.select %67, %68, %54 : vector<8x256xi1>, vector<8x256xi32>
    %c255_i32_27 = arith.constant 255 : i32
    %70 = tpu.dynamic_rotate %56 by %c255_i32_27 dim 1 : vector<8x256xi32>, i32 -> vector<8x256xi32>
    %71 = arith.select %67, %70, %56 : vector<8x256xi1>, vector<8x256xi32>
    %c255_i32_28 = arith.constant 255 : i32
    %72 = tpu.dynamic_rotate %52 by %c255_i32_28 dim 1 : vector<8x256xi32>, i32 -> vector<8x256xi32>
    %73 = arith.select %67, %72, %52 : vector<8x256xi1>, vector<8x256xi32>
    %c1_i32_29 = arith.constant 1 : i32
    %74 = vector.broadcast %c1_i32_29 : i32 to vector<8x256xi32>
    %75 = arith.subi %74, %61 : vector<8x256xi32>
    %76 = arith.muli %1, %75 : vector<8x256xi32>
    %c1_i32_30 = arith.constant 1 : i32
    %77 = vector.broadcast %c1_i32_30 : i32 to vector<8x256xi32>
    %78 = arith.select %67, %77, %76 : vector<8x256xi1>, vector<8x256xi32>
    %c1_i32_31 = arith.constant 1 : i32
    %79 = vector.broadcast %c1_i32_31 : i32 to vector<8x256xi32>
    %80 = arith.shrsi %73, %79 : vector<8x256xi32>
    %c1_i32_32 = arith.constant 1 : i32
    %81 = vector.broadcast %c1_i32_32 : i32 to vector<8x256xi32>
    %82 = arith.andi %80, %81 : vector<8x256xi32>
    %83 = arith.muli %78, %82 : vector<8x256xi32>
    %c254_i32 = arith.constant 254 : i32
    %84 = tpu.dynamic_rotate %83 by %c254_i32 dim 1 : vector<8x256xi32>, i32 -> vector<8x256xi32>
    %c1_i32_33 = arith.constant 1 : i32
    %85 = vector.broadcast %c1_i32_33 : i32 to vector<8x256xi32>
    %86 = arith.cmpi eq, %84, %85 : vector<8x256xi32>
    %c254_i32_34 = arith.constant 254 : i32
    %87 = vector.broadcast %c254_i32_34 : i32 to vector<8x256xi32>
    %88 = arith.cmpi slt, %0, %87 : vector<8x256xi32>
    %89 = arith.andi %86, %88 : vector<8x256xi1>
    %c254_i32_35 = arith.constant 254 : i32
    %90 = tpu.dynamic_rotate %69 by %c254_i32_35 dim 1 : vector<8x256xi32>, i32 -> vector<8x256xi32>
    %91 = arith.select %89, %90, %69 : vector<8x256xi1>, vector<8x256xi32>
    %c254_i32_36 = arith.constant 254 : i32
    %92 = tpu.dynamic_rotate %71 by %c254_i32_36 dim 1 : vector<8x256xi32>, i32 -> vector<8x256xi32>
    %93 = arith.select %89, %92, %71 : vector<8x256xi1>, vector<8x256xi32>
    %c254_i32_37 = arith.constant 254 : i32
    %94 = tpu.dynamic_rotate %73 by %c254_i32_37 dim 1 : vector<8x256xi32>, i32 -> vector<8x256xi32>
    %95 = arith.select %89, %94, %73 : vector<8x256xi1>, vector<8x256xi32>
    %c1_i32_38 = arith.constant 1 : i32
    %96 = vector.broadcast %c1_i32_38 : i32 to vector<8x256xi32>
    %97 = arith.subi %96, %83 : vector<8x256xi32>
    %98 = arith.muli %78, %97 : vector<8x256xi32>
    %c1_i32_39 = arith.constant 1 : i32
    %99 = vector.broadcast %c1_i32_39 : i32 to vector<8x256xi32>
    %100 = arith.select %89, %99, %98 : vector<8x256xi1>, vector<8x256xi32>
    %c2_i32_40 = arith.constant 2 : i32
    %101 = vector.broadcast %c2_i32_40 : i32 to vector<8x256xi32>
    %102 = arith.shrsi %95, %101 : vector<8x256xi32>
    %c1_i32_41 = arith.constant 1 : i32
    %103 = vector.broadcast %c1_i32_41 : i32 to vector<8x256xi32>
    %104 = arith.andi %102, %103 : vector<8x256xi32>
    %105 = arith.muli %100, %104 : vector<8x256xi32>
    %c252_i32 = arith.constant 252 : i32
    %106 = tpu.dynamic_rotate %105 by %c252_i32 dim 1 : vector<8x256xi32>, i32 -> vector<8x256xi32>
    %c1_i32_42 = arith.constant 1 : i32
    %107 = vector.broadcast %c1_i32_42 : i32 to vector<8x256xi32>
    %108 = arith.cmpi eq, %106, %107 : vector<8x256xi32>
    %c252_i32_43 = arith.constant 252 : i32
    %109 = vector.broadcast %c252_i32_43 : i32 to vector<8x256xi32>
    %110 = arith.cmpi slt, %0, %109 : vector<8x256xi32>
    %111 = arith.andi %108, %110 : vector<8x256xi1>
    %c252_i32_44 = arith.constant 252 : i32
    %112 = tpu.dynamic_rotate %91 by %c252_i32_44 dim 1 : vector<8x256xi32>, i32 -> vector<8x256xi32>
    %113 = arith.select %111, %112, %91 : vector<8x256xi1>, vector<8x256xi32>
    %c252_i32_45 = arith.constant 252 : i32
    %114 = tpu.dynamic_rotate %93 by %c252_i32_45 dim 1 : vector<8x256xi32>, i32 -> vector<8x256xi32>
    %115 = arith.select %111, %114, %93 : vector<8x256xi1>, vector<8x256xi32>
    %c252_i32_46 = arith.constant 252 : i32
    %116 = tpu.dynamic_rotate %95 by %c252_i32_46 dim 1 : vector<8x256xi32>, i32 -> vector<8x256xi32>
    %117 = arith.select %111, %116, %95 : vector<8x256xi1>, vector<8x256xi32>
    %c1_i32_47 = arith.constant 1 : i32
    %118 = vector.broadcast %c1_i32_47 : i32 to vector<8x256xi32>
    %119 = arith.subi %118, %105 : vector<8x256xi32>
    %120 = arith.muli %100, %119 : vector<8x256xi32>
    %c1_i32_48 = arith.constant 1 : i32
    %121 = vector.broadcast %c1_i32_48 : i32 to vector<8x256xi32>
    %122 = arith.select %111, %121, %120 : vector<8x256xi1>, vector<8x256xi32>
    %c3_i32 = arith.constant 3 : i32
    %123 = vector.broadcast %c3_i32 : i32 to vector<8x256xi32>
    %124 = arith.shrsi %117, %123 : vector<8x256xi32>
    %c1_i32_49 = arith.constant 1 : i32
    %125 = vector.broadcast %c1_i32_49 : i32 to vector<8x256xi32>
    %126 = arith.andi %124, %125 : vector<8x256xi32>
    %127 = arith.muli %122, %126 : vector<8x256xi32>
    %c248_i32 = arith.constant 248 : i32
    %128 = tpu.dynamic_rotate %127 by %c248_i32 dim 1 : vector<8x256xi32>, i32 -> vector<8x256xi32>
    %c1_i32_50 = arith.constant 1 : i32
    %129 = vector.broadcast %c1_i32_50 : i32 to vector<8x256xi32>
    %130 = arith.cmpi eq, %128, %129 : vector<8x256xi32>
    %c248_i32_51 = arith.constant 248 : i32
    %131 = vector.broadcast %c248_i32_51 : i32 to vector<8x256xi32>
    %132 = arith.cmpi slt, %0, %131 : vector<8x256xi32>
    %133 = arith.andi %130, %132 : vector<8x256xi1>
    %c248_i32_52 = arith.constant 248 : i32
    %134 = tpu.dynamic_rotate %113 by %c248_i32_52 dim 1 : vector<8x256xi32>, i32 -> vector<8x256xi32>
    %135 = arith.select %133, %134, %113 : vector<8x256xi1>, vector<8x256xi32>
    %c248_i32_53 = arith.constant 248 : i32
    %136 = tpu.dynamic_rotate %115 by %c248_i32_53 dim 1 : vector<8x256xi32>, i32 -> vector<8x256xi32>
    %137 = arith.select %133, %136, %115 : vector<8x256xi1>, vector<8x256xi32>
    %c248_i32_54 = arith.constant 248 : i32
    %138 = tpu.dynamic_rotate %117 by %c248_i32_54 dim 1 : vector<8x256xi32>, i32 -> vector<8x256xi32>
    %139 = arith.select %133, %138, %117 : vector<8x256xi1>, vector<8x256xi32>
    %c1_i32_55 = arith.constant 1 : i32
    %140 = vector.broadcast %c1_i32_55 : i32 to vector<8x256xi32>
    %141 = arith.subi %140, %127 : vector<8x256xi32>
    %142 = arith.muli %122, %141 : vector<8x256xi32>
    %c1_i32_56 = arith.constant 1 : i32
    %143 = vector.broadcast %c1_i32_56 : i32 to vector<8x256xi32>
    %144 = arith.select %133, %143, %142 : vector<8x256xi1>, vector<8x256xi32>
    %c4_i32_57 = arith.constant 4 : i32
    %145 = vector.broadcast %c4_i32_57 : i32 to vector<8x256xi32>
    %146 = arith.shrsi %139, %145 : vector<8x256xi32>
    %c1_i32_58 = arith.constant 1 : i32
    %147 = vector.broadcast %c1_i32_58 : i32 to vector<8x256xi32>
    %148 = arith.andi %146, %147 : vector<8x256xi32>
    %149 = arith.muli %144, %148 : vector<8x256xi32>
    %c240_i32 = arith.constant 240 : i32
    %150 = tpu.dynamic_rotate %149 by %c240_i32 dim 1 : vector<8x256xi32>, i32 -> vector<8x256xi32>
    %c1_i32_59 = arith.constant 1 : i32
    %151 = vector.broadcast %c1_i32_59 : i32 to vector<8x256xi32>
    %152 = arith.cmpi eq, %150, %151 : vector<8x256xi32>
    %c240_i32_60 = arith.constant 240 : i32
    %153 = vector.broadcast %c240_i32_60 : i32 to vector<8x256xi32>
    %154 = arith.cmpi slt, %0, %153 : vector<8x256xi32>
    %155 = arith.andi %152, %154 : vector<8x256xi1>
    %c240_i32_61 = arith.constant 240 : i32
    %156 = tpu.dynamic_rotate %135 by %c240_i32_61 dim 1 : vector<8x256xi32>, i32 -> vector<8x256xi32>
    %157 = arith.select %155, %156, %135 : vector<8x256xi1>, vector<8x256xi32>
    %c240_i32_62 = arith.constant 240 : i32
    %158 = tpu.dynamic_rotate %137 by %c240_i32_62 dim 1 : vector<8x256xi32>, i32 -> vector<8x256xi32>
    %159 = arith.select %155, %158, %137 : vector<8x256xi1>, vector<8x256xi32>
    %c240_i32_63 = arith.constant 240 : i32
    %160 = tpu.dynamic_rotate %139 by %c240_i32_63 dim 1 : vector<8x256xi32>, i32 -> vector<8x256xi32>
    %161 = arith.select %155, %160, %139 : vector<8x256xi1>, vector<8x256xi32>
    %c1_i32_64 = arith.constant 1 : i32
    %162 = vector.broadcast %c1_i32_64 : i32 to vector<8x256xi32>
    %163 = arith.subi %162, %149 : vector<8x256xi32>
    %164 = arith.muli %144, %163 : vector<8x256xi32>
    %c1_i32_65 = arith.constant 1 : i32
    %165 = vector.broadcast %c1_i32_65 : i32 to vector<8x256xi32>
    %166 = arith.select %155, %165, %164 : vector<8x256xi1>, vector<8x256xi32>
    %c5_i32 = arith.constant 5 : i32
    %167 = vector.broadcast %c5_i32 : i32 to vector<8x256xi32>
    %168 = arith.shrsi %161, %167 : vector<8x256xi32>
    %c1_i32_66 = arith.constant 1 : i32
    %169 = vector.broadcast %c1_i32_66 : i32 to vector<8x256xi32>
    %170 = arith.andi %168, %169 : vector<8x256xi32>
    %171 = arith.muli %166, %170 : vector<8x256xi32>
    %c224_i32 = arith.constant 224 : i32
    %172 = tpu.dynamic_rotate %171 by %c224_i32 dim 1 : vector<8x256xi32>, i32 -> vector<8x256xi32>
    %c1_i32_67 = arith.constant 1 : i32
    %173 = vector.broadcast %c1_i32_67 : i32 to vector<8x256xi32>
    %174 = arith.cmpi eq, %172, %173 : vector<8x256xi32>
    %c224_i32_68 = arith.constant 224 : i32
    %175 = vector.broadcast %c224_i32_68 : i32 to vector<8x256xi32>
    %176 = arith.cmpi slt, %0, %175 : vector<8x256xi32>
    %177 = arith.andi %174, %176 : vector<8x256xi1>
    %c224_i32_69 = arith.constant 224 : i32
    %178 = tpu.dynamic_rotate %157 by %c224_i32_69 dim 1 : vector<8x256xi32>, i32 -> vector<8x256xi32>
    %179 = arith.select %177, %178, %157 : vector<8x256xi1>, vector<8x256xi32>
    %c224_i32_70 = arith.constant 224 : i32
    %180 = tpu.dynamic_rotate %159 by %c224_i32_70 dim 1 : vector<8x256xi32>, i32 -> vector<8x256xi32>
    %181 = arith.select %177, %180, %159 : vector<8x256xi1>, vector<8x256xi32>
    %c224_i32_71 = arith.constant 224 : i32
    %182 = tpu.dynamic_rotate %161 by %c224_i32_71 dim 1 : vector<8x256xi32>, i32 -> vector<8x256xi32>
    %183 = arith.select %177, %182, %161 : vector<8x256xi1>, vector<8x256xi32>
    %c1_i32_72 = arith.constant 1 : i32
    %184 = vector.broadcast %c1_i32_72 : i32 to vector<8x256xi32>
    %185 = arith.subi %184, %171 : vector<8x256xi32>
    %186 = arith.muli %166, %185 : vector<8x256xi32>
    %c1_i32_73 = arith.constant 1 : i32
    %187 = vector.broadcast %c1_i32_73 : i32 to vector<8x256xi32>
    %188 = arith.select %177, %187, %186 : vector<8x256xi1>, vector<8x256xi32>
    %c6_i32 = arith.constant 6 : i32
    %189 = vector.broadcast %c6_i32 : i32 to vector<8x256xi32>
    %190 = arith.shrsi %183, %189 : vector<8x256xi32>
    %c1_i32_74 = arith.constant 1 : i32
    %191 = vector.broadcast %c1_i32_74 : i32 to vector<8x256xi32>
    %192 = arith.andi %190, %191 : vector<8x256xi32>
    %193 = arith.muli %188, %192 : vector<8x256xi32>
    %c192_i32 = arith.constant 192 : i32
    %194 = tpu.dynamic_rotate %193 by %c192_i32 dim 1 : vector<8x256xi32>, i32 -> vector<8x256xi32>
    %c1_i32_75 = arith.constant 1 : i32
    %195 = vector.broadcast %c1_i32_75 : i32 to vector<8x256xi32>
    %196 = arith.cmpi eq, %194, %195 : vector<8x256xi32>
    %c192_i32_76 = arith.constant 192 : i32
    %197 = vector.broadcast %c192_i32_76 : i32 to vector<8x256xi32>
    %198 = arith.cmpi slt, %0, %197 : vector<8x256xi32>
    %199 = arith.andi %196, %198 : vector<8x256xi1>
    %c192_i32_77 = arith.constant 192 : i32
    %200 = tpu.dynamic_rotate %179 by %c192_i32_77 dim 1 : vector<8x256xi32>, i32 -> vector<8x256xi32>
    %201 = arith.select %199, %200, %179 : vector<8x256xi1>, vector<8x256xi32>
    %c192_i32_78 = arith.constant 192 : i32
    %202 = tpu.dynamic_rotate %181 by %c192_i32_78 dim 1 : vector<8x256xi32>, i32 -> vector<8x256xi32>
    %203 = arith.select %199, %202, %181 : vector<8x256xi1>, vector<8x256xi32>
    %c192_i32_79 = arith.constant 192 : i32
    %204 = tpu.dynamic_rotate %183 by %c192_i32_79 dim 1 : vector<8x256xi32>, i32 -> vector<8x256xi32>
    %205 = arith.select %199, %204, %183 : vector<8x256xi1>, vector<8x256xi32>
    %c1_i32_80 = arith.constant 1 : i32
    %206 = vector.broadcast %c1_i32_80 : i32 to vector<8x256xi32>
    %207 = arith.subi %206, %193 : vector<8x256xi32>
    %208 = arith.muli %188, %207 : vector<8x256xi32>
    %c1_i32_81 = arith.constant 1 : i32
    %209 = vector.broadcast %c1_i32_81 : i32 to vector<8x256xi32>
    %210 = arith.select %199, %209, %208 : vector<8x256xi1>, vector<8x256xi32>
    %c7_i32 = arith.constant 7 : i32
    %211 = vector.broadcast %c7_i32 : i32 to vector<8x256xi32>
    %212 = arith.shrsi %205, %211 : vector<8x256xi32>
    %c1_i32_82 = arith.constant 1 : i32
    %213 = vector.broadcast %c1_i32_82 : i32 to vector<8x256xi32>
    %214 = arith.andi %212, %213 : vector<8x256xi32>
    %215 = arith.muli %210, %214 : vector<8x256xi32>
    %c128_i32_83 = arith.constant 128 : i32
    %216 = tpu.dynamic_rotate %215 by %c128_i32_83 dim 1 : vector<8x256xi32>, i32 -> vector<8x256xi32>
    %c1_i32_84 = arith.constant 1 : i32
    %217 = vector.broadcast %c1_i32_84 : i32 to vector<8x256xi32>
    %218 = arith.cmpi eq, %216, %217 : vector<8x256xi32>
    %c128_i32_85 = arith.constant 128 : i32
    %219 = vector.broadcast %c128_i32_85 : i32 to vector<8x256xi32>
    %220 = arith.cmpi slt, %0, %219 : vector<8x256xi32>
    %221 = arith.andi %218, %220 : vector<8x256xi1>
    %c128_i32_86 = arith.constant 128 : i32
    %222 = tpu.dynamic_rotate %201 by %c128_i32_86 dim 1 : vector<8x256xi32>, i32 -> vector<8x256xi32>
    %223 = arith.select %221, %222, %201 : vector<8x256xi1>, vector<8x256xi32>
    %c128_i32_87 = arith.constant 128 : i32
    %224 = tpu.dynamic_rotate %203 by %c128_i32_87 dim 1 : vector<8x256xi32>, i32 -> vector<8x256xi32>
    %225 = arith.select %221, %224, %203 : vector<8x256xi1>, vector<8x256xi32>
    %226 = vector.extract_strided_slice %49 {offsets = [0, 255], sizes = [8, 1], strides = [1, 1]} : vector<8x256xi32> to vector<8x1xi32>
    %227 = vector.broadcast %226 : vector<8x1xi32> to vector<8x256xi32>
    %228 = arith.cmpi slt, %0, %227 : vector<8x256xi32>
    %c-1_i32 = arith.constant -1 : i32
    %229 = vector.broadcast %c-1_i32 : i32 to vector<8x256xi32>
    %230 = arith.select %228, %223, %229 : vector<8x256xi1>, vector<8x256xi32>
    %c0_88 = arith.constant 0 : index
    %c0_89 = arith.constant 0 : index
    %c0_90 = arith.constant 0 : index
    %231 = vector.load %arg3[%c0_88, %c0_89, %c0_90] : memref<2x8x256xi32, #tpu.memory_space<vmem>>, vector<1x8x256xi32>
    %232 = vector.shape_cast %231 : vector<1x8x256xi32> to vector<8x256xi32>
    %233 = vector.shape_cast %230 : vector<8x256xi32> to vector<1x8x256xi32>
    tpu.vector_store %arg3[%c0_88, %c0_89, %c0_90], %233 {strides = array<i32>} : memref<2x8x256xi32, #tpu.memory_space<vmem>>, vector<1x8x256xi32>,
    %c-1_i32_91 = arith.constant -1 : i32
    %234 = vector.broadcast %c-1_i32_91 : i32 to vector<8x256xi32>
    %235 = arith.select %228, %225, %234 : vector<8x256xi1>, vector<8x256xi32>
    %c1_92 = arith.constant 1 : index
    %c0_93 = arith.constant 0 : index
    %c0_94 = arith.constant 0 : index
    %236 = vector.load %arg3[%c1_92, %c0_93, %c0_94] : memref<2x8x256xi32, #tpu.memory_space<vmem>>, vector<1x8x256xi32>
    %237 = vector.shape_cast %236 : vector<1x8x256xi32> to vector<8x256xi32>
    %238 = vector.shape_cast %235 : vector<8x256xi32> to vector<1x8x256xi32>
    tpu.vector_store %arg3[%c1_92, %c0_93, %c0_94], %238 {strides = array<i32>} : memref<2x8x256xi32, #tpu.memory_space<vmem>>, vector<1x8x256xi32>,
    return
  }
  func.func @transform_0(%arg0: i32) -> (i32, i32) {
    %c0_i32 = arith.constant 0 : i32
    %c0_i32_0 = arith.constant 0 : i32
    return %arg0, %c0_i32 : i32, i32
  }
  func.func @transform_1(%arg0: i32) -> (i32, i32, i32) {
    %c0_i32 = arith.constant 0 : i32
    %c0_i32_0 = arith.constant 0 : i32
    %c0_i32_1 = arith.constant 0 : i32
    return %c0_i32, %arg0, %c0_i32_0 : i32, i32, i32
  }
  func.func @transform_2(%arg0: i32) -> (i32, i32, i32) {
    %c0_i32 = arith.constant 0 : i32
    %c0_i32_0 = arith.constant 0 : i32
    %c0_i32_1 = arith.constant 0 : i32
    return %c0_i32, %arg0, %c0_i32_0 : i32, i32, i32
  }
}

</mosaic_0001>

<bundles_post_ra>
// kernel: tpu_custom_call.1
= control target key start
LH: loop header
LB: loop body
LE: loop exit
PB: predicated region body
PF: predicated region fallthrough
CT: control target
= control target key end

     0   :  { %7 = vsyncpa [#allocation3], 0  ;;  %s964_s0 = inlined_call_operand.hbm [shape: s32[8,256], index: 0, kind: input, shape index: {}]   ;;  %s965_s1 = inlined_call_operand.hbm [shape: s32[2,8,256], index: 1, kind: input, shape index: {}]   ;;  %s966_s2 = inlined_call_operand.hbm [shape: s32[2,8,256], index: 2, kind: output, shape index: {}]  }
   0x1   :  { %8 = vsyncpa [#allocation6], 0 }
   0x2   :  { %9 = vsyncpa [#allocation4], 0  ;;  %s622_s9 = smov [#allocation2]   ;;  %s623_s11 = smov [#allocation5]  }
   0x3   :  { %s16_s10 = sshll.u32 %s622_s9, 4  ;;  %s25_s12 = sshll.u32 %s623_s11, 4  ;;  %s17_s10 = int_to_ptr.vmem [resolvable:$true] %s16_s10  ;;  %s26_s12 = int_to_ptr.vmem [resolvable:$true] %s25_s12 }
   0x4   :  { %s564_s13 = scalar_lea.vmem %s17_s10, 256  ;;  %p569_p1 = scmp.lt.s32.totalorder %s17_s10, %s17_s10 }
   0x5   :  { %p565_p0 = scmp.ne.s32.totalorder %s17_s10, %s564_s13  ;;  %p570_p2 = scmp.lt.s32.totalorder %s564_s13, %s564_s13 }
   0x7   :  { %p571_p3 = por %p570_p2, %p569_p1 }
   0x9   :  { %p572_p4 = pnand %p571_p3, %p565_p0 }
   0xb   :  { %575 = shalt.err (!%p572_p4)
}
   0xc   :  { %19 = dma.hbm_to_vmem [thread:$0]  %s964_s0, 256, %s17_s10, [#allocation3]  }
   0xd   :  { %s584_s16 = scalar_lea.vmem %s26_s12, 512  ;;  %p589_p6 = scmp.lt.s32.totalorder %s26_s12, %s26_s12 }
   0xe   :  { %p585_p5 = scmp.ne.s32.totalorder %s26_s12, %s584_s16  ;;  %p590_p7 = scmp.lt.s32.totalorder %s584_s16, %s584_s16 }
  0x10   :  { %p591_p8 = por %p590_p7, %p589_p6 }
  0x12   :  { %p592_p9 = pnand %p591_p8, %p585_p5 }
  0x14   :  { %595 = shalt.err (!%p592_p9)
}
  0x15   :  { %s624_s17 = smov 256   ;;  %s625_s18 = smov 16  }
  0x16   :  { %31 = dma.hbm_to_vmem [thread:$0]  %s965_s1, 512, %s26_s12, [#allocation6], %s624_s17, %s624_s17, %s625_s18  }
  0x17   :  { %616 = dma.done.wait [#allocation3], 256  }
  0x18   :  { %617 = vsyncadd [#allocation3], 4294967040 }
  0x19   :  { %618 = dma.done.wait [#allocation6], 512  }
  0x1a   :  { %619 = vsyncadd [#allocation6], 4294966784  ;;  %v664_v0 = vld [vmem:[#allocation2] sm:$0xff]  ;;  %s626_s0 = smov 1   ;;  %v667_v1 = vld [vmem:[#allocation2 + $0x8] sm:$0xff]  ;;  %v38_v2 = vlaneseq  ;;  %s627_s1 = smov 2  }
  0x1b   :  { %43 = vrot.lane.b32.xlu0 %v664_v0, %s626_s0  ;;  %s628_s21 = smov 4   ;;  %s629_s22 = smov 8   ;;  %v144_v63 = vld [vmem:[#allocation5] sm:$0xff] }
  0x1c   :  { %v670_v3 = vand.u32 127, %v38_v2  ;;  %s630_s23 = smov 32   ;;  %s631_s24 = smov 64   ;;  %v145_v2 = vld [vmem:[#allocation5 + $0x8] sm:$0xff] }
  0x1d   :  { %s632_s25 = smov 127   ;;  %s633_s26 = smov 126  }
  0x1e   :  { %vm47_vm0 = vcmp.lt.s32.totalorder %v670_v3, 1  ;;  %vm50_vm1 = vcmp.ge.s32.totalorder %v670_v3, 1  ;;  %vm60_vm2 = vcmp.lt.s32.totalorder %v670_v3, 2  ;;  %vm63_vm3 = vcmp.ge.s32.totalorder %v670_v3, 2  ;;  %s634_s27 = smov 124   ;;  %s635_s28 = smov 120  }
  0x1f   :  { %45 = vrot.lane.b32.xlu0 %v667_v1, %s626_s0  ;;  %vm73_vm4 = vcmp.lt.s32.totalorder %v670_v3, 4  ;;  %vm76_vm5 = vcmp.ge.s32.totalorder %v670_v3, 4  ;;  %vm86_vm6 = vcmp.lt.s32.totalorder %v670_v3, 8  ;;  %vm89_vm7 = vcmp.ge.s32.totalorder %v670_v3, 8  ;;  %s636_s29 = smov 112   ;;  %s637_s30 = smov 96  }
  0x20   :  { %vm99_vm8 = vcmp.lt.s32.totalorder %v670_v3, 16  ;;  %vm102_vm9 = vcmp.ge.s32.totalorder %v670_v3, 16  ;;  %vm112_vm10 = vcmp.lt.s32.totalorder %v670_v3, 32  ;;  %vm115_vm11 = vcmp.ge.s32.totalorder %v670_v3, 32  ;;  %s639_s3 = smov [#allocation7]  }
  0x21   :  { %vm125_vm12 = vcmp.lt.s32.totalorder %v670_v3, 64  ;;  %v692_v47 = vadd.s32 128, %v670_v3  ;;  %vm128_vm13 = vcmp.ge.s32.totalorder %v670_v3, 64  ;;  %v140_v49 = vadd.s32 1, %v670_v3  ;;  %s524_s4 = sshll.u32 %s639_s3, 4  ;;  %s525_s4 = int_to_ptr.vmem [resolvable:$true] %s524_s4 }
  0x22   :  { %vm157_vm14 = vcmp.lt.s32.totalorder %v670_v3, 127  ;;  %s596_s5 = scalar_lea.vmem %s525_s4, 512  ;;  %p601_p11 = scmp.lt.s32.totalorder %s525_s4, %s525_s4 }
  0x23   :  { %v141_v54 = vadd.s32 1, %v692_v47  ;;  %vm163_vm15 = vcmp.lt.s32.totalorder %v692_v47, 255  ;;  %p597_p10 = scmp.ne.s32.totalorder %s525_s4, %s596_s5  ;;  %p602_p12 = scmp.lt.s32.totalorder %s596_s5, %s596_s5 }
  0x25   :  { %p603_p13 = por %p602_p12, %p601_p11 }
  0x27   :  { %p604_p0 = pnand %p603_p13, %p597_p10 }
  0x8d   :  { %v44_v4 = vpop.permute.xlu0 %43 }
  0x91   :  { %v46_v5 = vpop.permute.xlu0 %45 }
  0x92   :  { %v49_v6 = vsel %vm47_vm0, %v46_v5, %v44_v4  ;;  %v48_v9 = vsel %vm47_vm0, %v44_v4, %v46_v5  ;;  %v147_v4 = vld [vmem:[#allocation5 + $0x10] sm:$0xff]  ;;  %v148_v5 = vld [vmem:[#allocation5 + $0x18] sm:$0xff] }
  0x93   :  { %v52_v7 = vsel %vm50_vm1, %v49_v6, 0  ;;  %v55_v10 = vadd.s32 %v48_v9, %v667_v1 }
  0x94   :  { %v54_v8 = vadd.s32 %v52_v7, %v664_v0 }
  0x96   :  { %56 = vrot.lane.b32.xlu1 %v54_v8, %s627_s1 }
  0x9a   :  { %58 = vrot.lane.b32.xlu1 %v55_v10, %s627_s1 }
 0x108   :  { %v57_v11 = vpop.permute.xlu1 %56 }
 0x10c   :  { %v59_v12 = vpop.permute.xlu1 %58 }
 0x10d   :  { %v61_v13 = vsel %vm60_vm2, %v57_v11, %v59_v12  ;;  %v62_v14 = vsel %vm60_vm2, %v59_v12, %v57_v11 }
 0x10e   :  { %v65_v15 = vsel %vm63_vm3, %v62_v14, 0  ;;  %v68_v16 = vadd.s32 %v61_v13, %v55_v10  ;;  %vm206_vm3 = vcmp.lt.s32.totalorder %v670_v3, 126 }
 0x10f   :  { %v67_v17 = vadd.s32 %v65_v15, %v54_v8 }
 0x110   :  { %71 = vrot.lane.b32.xlu1 %v68_v16, %s628_s21 }
 0x111   :  { %69 = vrot.lane.b32.xlu0 %v67_v17, %s628_s21 }
 0x182   :  { %v72_v18 = vpop.permute.xlu1 %71 }
 0x183   :  { %v70_v19 = vpop.permute.xlu0 %69 }
 0x184   :  { %v74_v20 = vsel %vm73_vm4, %v70_v19, %v72_v18  ;;  %v75_v21 = vsel %vm73_vm4, %v72_v18, %v70_v19  ;;  %vm212_vm4 = vcmp.lt.s32.totalorder %v692_v47, 254 }
 0x185   :  { %v78_v22 = vsel %vm76_vm5, %v75_v21, 0  ;;  %v81_v23 = vadd.s32 %v74_v20, %v68_v16 }
 0x186   :  { %v80_v24 = vadd.s32 %v78_v22, %v67_v17 }
 0x187   :  { %84 = vrot.lane.b32.xlu1 %v81_v23, %s629_s22 }
 0x188   :  { %82 = vrot.lane.b32.xlu0 %v80_v24, %s629_s22 }
 0x1f9   :  { %v85_v25 = vpop.permute.xlu1 %84 }
 0x1fa   :  { %v83_v26 = vpop.permute.xlu0 %82 }
 0x1fb   :  { %v87_v27 = vsel %vm86_vm6, %v83_v26, %v85_v25  ;;  %v88_v28 = vsel %vm86_vm6, %v85_v25, %v83_v26 }
 0x1fc   :  { %v94_v29 = vadd.s32 %v87_v27, %v81_v23  ;;  %v91_v30 = vsel %vm89_vm7, %v88_v28, 0 }
 0x1fd   :  { %v93_v31 = vadd.s32 %v91_v30, %v80_v24 }
 0x1fe   :  { %97 = vrot.lane.b32.xlu1 %v94_v29, %s625_s18 }
 0x1ff   :  { %95 = vrot.lane.b32.xlu0 %v93_v31, %s625_s18 }
 0x270   :  { %v98_v32 = vpop.permute.xlu1 %97 }
 0x271   :  { %v96_v33 = vpop.permute.xlu0 %95 }
 0x272   :  { %v100_v34 = vsel %vm99_vm8, %v96_v33, %v98_v32  ;;  %v101_v35 = vsel %vm99_vm8, %v98_v32, %v96_v33  ;;  %vm255_vm8 = vcmp.lt.s32.totalorder %v670_v3, 124 }
 0x273   :  { %v104_v36 = vsel %vm102_vm9, %v101_v35, 0  ;;  %v107_v37 = vadd.s32 %v100_v34, %v94_v29  ;;  %vm261_vm9 = vcmp.lt.s32.totalorder %v692_v47, 252 }
 0x274   :  { %v106_v38 = vadd.s32 %v104_v36, %v93_v31 }
 0x275   :  { %110 = vrot.lane.b32.xlu1 %v107_v37, %s630_s23 }
 0x276   :  { %108 = vrot.lane.b32.xlu0 %v106_v38, %s630_s23 }
 0x2e7   :  { %v111_v39 = vpop.permute.xlu1 %110 }
 0x2e8   :  { %v109_v40 = vpop.permute.xlu0 %108 }
 0x2e9   :  { %v113_v41 = vsel %vm112_vm10, %v109_v40, %v111_v39  ;;  %v114_v42 = vsel %vm112_vm10, %v111_v39, %v109_v40 }
 0x2ea   :  { %v117_v43 = vsel %vm115_vm11, %v114_v42, 0  ;;  %v120_v44 = vadd.s32 %v113_v41, %v107_v37 }
 0x2eb   :  { %v119_v45 = vadd.s32 %v117_v43, %v106_v38 }
 0x2ec   :  { %123 = vrot.lane.b32.xlu1 %v120_v44, %s631_s24 }
 0x2ed   :  { %121 = vrot.lane.b32.xlu0 %v119_v45, %s631_s24 }
 0x35e   :  { %v124_v46 = vpop.permute.xlu1 %123 }
 0x35f   :  { %v122_v48 = vpop.permute.xlu0 %121 }
 0x360   :  { %v126_v50 = vsel %vm125_vm12, %v122_v48, %v124_v46  ;;  %v127_v51 = vsel %vm125_vm12, %v124_v46, %v122_v48 }
 0x361   :  { %v130_v52 = vsel %vm128_vm13, %v127_v51, 0  ;;  %v133_v53 = vadd.s32 %v126_v50, %v120_v44 }
 0x362   :  { %v132_v55 = vadd.s32 %v130_v52, %v119_v45 }
 0x364   :  { %v701_v56 = vadd.s32 %v133_v53, %v132_v55  ;;  %v142_v57 = vsub.s32 %v140_v49, %v132_v55 }
 0x366   :  { %v143_v58 = vsub.s32 %v141_v54, %v701_v56  ;;  %v149_v59 = vand.u32 1, %v142_v57 }
 0x368   :  { %v151_v60 = vmul.u32 %v149_v59, %v664_v0  ;;  %v150_v61 = vand.u32 1, %v143_v58 }
 0x36a   :  { %153 = vrot.lane.b32.xlu0 %v151_v60, %s632_s25  ;;  %v152_v62 = vmul.u32 %v150_v61, %v667_v1  ;;  %v190_v10 = vsub.s32 1, %v151_v60 }
 0x36c   :  { %155 = vrot.lane.b32.xlu1 %v152_v62, %s632_s25  ;;  %v191_v11 = vsub.s32 1, %v152_v62  ;;  %v192_v21 = vmul.u32 %v190_v10, %v664_v0 }
 0x36e   :  { %182 = vrot.lane.b32.xlu0 %v142_v57, %s632_s25  ;;  %v193_v22 = vmul.u32 %v191_v11, %v667_v1 }
 0x370   :  { %184 = vrot.lane.b32.xlu1 %v143_v58, %s632_s25 }
 0x372   :  { %166 = vrot.lane.b32.xlu0 %v144_v63, %s632_s25 }
 0x374   :  { %168 = vrot.lane.b32.xlu1 %v145_v2, %s632_s25 }
 0x376   :  { %174 = vrot.lane.b32.xlu0 %v147_v4, %s632_s25 }
 0x378   :  { %176 = vrot.lane.b32.xlu1 %v148_v5, %s632_s25 }
 0x3dc   :  { %v154_v6 = vpop.permute.xlu0 %153 }
 0x3de   :  { %v156_v7 = vpop.permute.xlu1 %155 }
 0x3df   :  { %v159_v8 = vsel %vm157_vm14, %v156_v7, %v154_v6  ;;  %v158_v9 = vsel %vm157_vm14, %v154_v6, %v156_v7 }
 0x3e0   :  { %vm161_vm0 = vcmp.eq.s32.totalorder %v159_v8, 1  ;;  %v183_v12 = vpop.permute.xlu0 %182  ;;  %vm160_vm1 = vcmp.eq.s32.totalorder %v158_v9, 1 }
 0x3e1   :  { %vm712_vm2 = vmand %vm161_vm0, %vm163_vm15  ;;  %v194_v25 = vsel %vm160_vm1, 1, %v192_v21  ;;  %vm310_vm15 = vcmp.lt.s32.totalorder %v692_v47, 248 }
 0x3e2   :  { %v185_v13 = vpop.permute.xlu1 %184  ;;  %v195_v26 = vsel %vm712_vm2, 1, %v193_v22 }
 0x3e3   :  { %v186_v15 = vsel %vm157_vm14, %v183_v12, %v185_v13  ;;  %v187_v16 = vsel %vm157_vm14, %v185_v13, %v183_v12 }
 0x3e4   :  { %v188_v17 = vsel %vm160_vm1, %v186_v15, %v142_v57  ;;  %v189_v18 = vsel %vm712_vm2, %v187_v16, %v143_v58  ;;  %v167_v29 = vpop.permute.xlu0 %166 }
 0x3e5   :  { %v196_v19 = vshra.s32 %v188_v17, 1  ;;  %v197_v20 = vshra.s32 %v189_v18, 1 }
 0x3e6   :  { %v169_v30 = vpop.permute.xlu1 %168 }
 0x3e7   :  { %v198_v23 = vand.u32 1, %v196_v19  ;;  %v199_v24 = vand.u32 1, %v197_v20  ;;  %v170_v1 = vsel %vm157_vm14, %v167_v29, %v169_v30  ;;  %v171_v34 = vsel %vm157_vm14, %v169_v30, %v167_v29 }
 0x3e8   :  { %v175_v35 = vpop.permute.xlu0 %174  ;;  %v172_v37 = vsel %vm160_vm1, %v170_v1, %v144_v63  ;;  %v173_v38 = vsel %vm712_vm2, %v171_v34, %v145_v2 }
 0x3e9   :  { %v200_v27 = vmul.u32 %v198_v23, %v194_v25  ;;  %v201_v28 = vmul.u32 %v199_v24, %v195_v26 }
 0x3ea   :  { %v177_v36 = vpop.permute.xlu1 %176 }
 0x3eb   :  { %202 = vrot.lane.b32.xlu0 %v200_v27, %s633_s26  ;;  %v239_v31 = vsub.s32 1, %v200_v27  ;;  %204 = vrot.lane.b32.xlu1 %v201_v28, %s633_s26  ;;  %v240_v32 = vsub.s32 1, %v201_v28  ;;  %v178_v39 = vsel %vm157_vm14, %v175_v35, %v177_v36  ;;  %v179_v40 = vsel %vm157_vm14, %v177_v36, %v175_v35 }
 0x3ec   :  { %v180_v41 = vsel %vm160_vm1, %v178_v39, %v147_v4  ;;  %v181_v42 = vsel %vm712_vm2, %v179_v40, %v148_v5  ;;  %vm304_vm14 = vcmp.lt.s32.totalorder %v670_v3, 120 }
 0x3ed   :  { %v241_v33 = vmul.u32 %v239_v31, %v194_v25  ;;  %v242_v0 = vmul.u32 %v240_v32, %v195_v26 }
 0x3ef   :  { %231 = vrot.lane.b32.xlu0 %v188_v17, %s633_s26  ;;  %233 = vrot.lane.b32.xlu1 %v189_v18, %s633_s26 }
 0x3f3   :  { %215 = vrot.lane.b32.xlu0 %v172_v37, %s633_s26  ;;  %217 = vrot.lane.b32.xlu1 %v173_v38, %s633_s26 }
 0x3f7   :  { %223 = vrot.lane.b32.xlu0 %v180_v41, %s633_s26  ;;  %225 = vrot.lane.b32.xlu1 %v181_v42, %s633_s26 }
 0x45d   :  { %v203_v43 = vpop.permute.xlu0 %202  ;;  %v205_v44 = vpop.permute.xlu1 %204 }
 0x45e   :  { %v208_v45 = vsel %vm206_vm3, %v205_v44, %v203_v43  ;;  %v207_v46 = vsel %vm206_vm3, %v203_v43, %v205_v44 }
 0x45f   :  { %vm210_vm5 = vcmp.eq.s32.totalorder %v208_v45, 1  ;;  %vm209_vm6 = vcmp.eq.s32.totalorder %v207_v46, 1 }
 0x460   :  { %vm748_vm7 = vmand %vm210_vm5, %vm212_vm4  ;;  %v243_v60 = vsel %vm209_vm6, 1, %v241_v33  ;;  %vm359_vm4 = vcmp.lt.s32.totalorder %v692_v47, 240 }
 0x461   :  { %v232_v48 = vpop.permute.xlu0 %231  ;;  %v234_v49 = vpop.permute.xlu1 %233  ;;  %v244_v61 = vsel %vm748_vm7, 1, %v242_v0 }
 0x462   :  { %v235_v51 = vsel %vm206_vm3, %v232_v48, %v234_v49  ;;  %v236_v52 = vsel %vm206_vm3, %v234_v49, %v232_v48 }
 0x463   :  { %v237_v53 = vsel %vm209_vm6, %v235_v51, %v188_v17  ;;  %v238_v54 = vsel %vm748_vm7, %v236_v52, %v189_v18 }
 0x464   :  { %v245_v55 = vshra.s32 %v237_v53, 2  ;;  %v246_v57 = vshra.s32 %v238_v54, 2 }
 0x465   :  { %v216_v2 = vpop.permute.xlu0 %215  ;;  %v218_v4 = vpop.permute.xlu1 %217 }
 0x466   :  { %v247_v58 = vand.u32 1, %v245_v55  ;;  %v248_v59 = vand.u32 1, %v246_v57  ;;  %v219_v9 = vsel %vm206_vm3, %v216_v2, %v218_v4  ;;  %v220_v10 = vsel %vm206_vm3, %v218_v4, %v216_v2 }
 0x467   :  { %v221_v13 = vsel %vm209_vm6, %v219_v9, %v172_v37  ;;  %v222_v14 = vsel %vm748_vm7, %v220_v10, %v173_v38 }
 0x468   :  { %v249_v62 = vmul.u32 %v247_v58, %v243_v60  ;;  %v250_v63 = vmul.u32 %v248_v59, %v244_v61 }
 0x469   :  { %v224_v11 = vpop.permute.xlu0 %223  ;;  %v226_v12 = vpop.permute.xlu1 %225 }
 0x46a   :  { %251 = vrot.lane.b32.xlu0 %v249_v62, %s634_s27  ;;  %v288_v5 = vsub.s32 1, %v249_v62  ;;  %253 = vrot.lane.b32.xlu1 %v250_v63, %s634_s27  ;;  %v289_v6 = vsub.s32 1, %v250_v63  ;;  %v227_v15 = vsel %vm206_vm3, %v224_v11, %v226_v12  ;;  %v228_v16 = vsel %vm206_vm3, %v226_v12, %v224_v11 }
 0x46b   :  { %v229_v17 = vsel %vm209_vm6, %v227_v15, %v180_v41  ;;  %v230_v18 = vsel %vm748_vm7, %v228_v16, %v181_v42  ;;  %vm353_vm3 = vcmp.lt.s32.totalorder %v670_v3, 112 }
 0x46c   :  { %v290_v7 = vmul.u32 %v288_v5, %v243_v60  ;;  %v291_v8 = vmul.u32 %v289_v6, %v244_v61 }
 0x46e   :  { %280 = vrot.lane.b32.xlu0 %v237_v53, %s634_s27  ;;  %282 = vrot.lane.b32.xlu1 %v238_v54, %s634_s27 }
 0x472   :  { %264 = vrot.lane.b32.xlu0 %v221_v13, %s634_s27  ;;  %266 = vrot.lane.b32.xlu1 %v222_v14, %s634_s27 }
 0x476   :  { %272 = vrot.lane.b32.xlu0 %v229_v17, %s634_s27  ;;  %274 = vrot.lane.b32.xlu1 %v230_v18, %s634_s27 }
 0x4dc   :  { %v252_v19 = vpop.permute.xlu0 %251  ;;  %v254_v20 = vpop.permute.xlu1 %253 }
 0x4dd   :  { %v257_v21 = vsel %vm255_vm8, %v254_v20, %v252_v19  ;;  %v256_v22 = vsel %vm255_vm8, %v252_v19, %v254_v20 }
 0x4de   :  { %vm259_vm10 = vcmp.eq.s32.totalorder %v257_v21, 1  ;;  %vm258_vm11 = vcmp.eq.s32.totalorder %v256_v22, 1 }
 0x4df   :  { %vm782_vm13 = vmand %vm259_vm10, %vm261_vm9  ;;  %v292_v0 = vsel %vm258_vm11, 1, %v290_v7  ;;  %vm408_vm9 = vcmp.lt.s32.totalorder %v692_v47, 224 }
 0x4e0   :  { %v281_v23 = vpop.permute.xlu0 %280  ;;  %v283_v24 = vpop.permute.xlu1 %282  ;;  %v293_v1 = vsel %vm782_vm13, 1, %v291_v8 }
 0x4e1   :  { %v284_v26 = vsel %vm255_vm8, %v281_v23, %v283_v24  ;;  %v285_v27 = vsel %vm255_vm8, %v283_v24, %v281_v23 }
 0x4e2   :  { %v286_v28 = vsel %vm258_vm11, %v284_v26, %v237_v53  ;;  %v287_v29 = vsel %vm782_vm13, %v285_v27, %v238_v54 }
 0x4e3   :  { %v294_v30 = vshra.s32 %v286_v28, 3  ;;  %v295_v31 = vshra.s32 %v287_v29, 3 }
 0x4e4   :  { %v265_v36 = vpop.permute.xlu0 %264  ;;  %v267_v37 = vpop.permute.xlu1 %266 }
 0x4e5   :  { %v296_v32 = vand.u32 1, %v294_v30  ;;  %v297_v33 = vand.u32 1, %v295_v31  ;;  %v268_v42 = vsel %vm255_vm8, %v265_v36, %v267_v37  ;;  %v269_v43 = vsel %vm255_vm8, %v267_v37, %v265_v36 }
 0x4e6   :  { %v270_v46 = vsel %vm258_vm11, %v268_v42, %v221_v13  ;;  %v271_v48 = vsel %vm782_vm13, %v269_v43, %v222_v14 }
 0x4e7   :  { %v298_v34 = vmul.u32 %v296_v32, %v292_v0  ;;  %v299_v35 = vmul.u32 %v297_v33, %v293_v1 }
 0x4e8   :  { %v273_v44 = vpop.permute.xlu0 %272  ;;  %v275_v45 = vpop.permute.xlu1 %274 }
 0x4e9   :  { %300 = vrot.lane.b32.xlu0 %v298_v34, %s635_s28  ;;  %v337_v38 = vsub.s32 1, %v298_v34  ;;  %302 = vrot.lane.b32.xlu1 %v299_v35, %s635_s28  ;;  %v338_v39 = vsub.s32 1, %v299_v35  ;;  %v276_v49 = vsel %vm255_vm8, %v273_v44, %v275_v45  ;;  %v277_v50 = vsel %vm255_vm8, %v275_v45, %v273_v44 }
 0x4ea   :  { %v278_v51 = vsel %vm258_vm11, %v276_v49, %v229_v17  ;;  %v279_v52 = vsel %vm782_vm13, %v277_v50, %v230_v18  ;;  %vm402_vm8 = vcmp.lt.s32.totalorder %v670_v3, 96 }
 0x4eb   :  { %v339_v40 = vmul.u32 %v337_v38, %v292_v0  ;;  %v340_v41 = vmul.u32 %v338_v39, %v293_v1 }
 0x4ed   :  { %329 = vrot.lane.b32.xlu0 %v286_v28, %s635_s28  ;;  %331 = vrot.lane.b32.xlu1 %v287_v29, %s635_s28 }
 0x4f1   :  { %313 = vrot.lane.b32.xlu0 %v270_v46, %s635_s28  ;;  %315 = vrot.lane.b32.xlu1 %v271_v48, %s635_s28 }
 0x4f5   :  { %321 = vrot.lane.b32.xlu0 %v278_v51, %s635_s28  ;;  %323 = vrot.lane.b32.xlu1 %v279_v52, %s635_s28 }
 0x55b   :  { %v301_v53 = vpop.permute.xlu0 %300  ;;  %v303_v54 = vpop.permute.xlu1 %302 }
 0x55c   :  { %v306_v55 = vsel %vm304_vm14, %v303_v54, %v301_v53  ;;  %v305_v57 = vsel %vm304_vm14, %v301_v53, %v303_v54 }
 0x55d   :  { %vm308_vm0 = vcmp.eq.s32.totalorder %v306_v55, 1  ;;  %vm307_vm1 = vcmp.eq.s32.totalorder %v305_v57, 1 }
 0x55e   :  { %vm816_vm2 = vmand %vm308_vm0, %vm310_vm15  ;;  %v341_v8 = vsel %vm307_vm1, 1, %v339_v40 }
 0x55f   :  { %v330_v58 = vpop.permute.xlu0 %329  ;;  %v332_v59 = vpop.permute.xlu1 %331  ;;  %v342_v9 = vsel %vm816_vm2, 1, %v340_v41 }
 0x560   :  { %v333_v61 = vsel %vm304_vm14, %v330_v58, %v332_v59  ;;  %v334_v62 = vsel %vm304_vm14, %v332_v59, %v330_v58 }
 0x561   :  { %v335_v63 = vsel %vm307_vm1, %v333_v61, %v286_v28  ;;  %v336_v2 = vsel %vm816_vm2, %v334_v62, %v287_v29 }
 0x562   :  { %v343_v4 = vshra.s32 %v335_v63, 4  ;;  %v344_v5 = vshra.s32 %v336_v2, 4 }
 0x563   :  { %v314_v12 = vpop.permute.xlu0 %313  ;;  %v316_v13 = vpop.permute.xlu1 %315 }
 0x564   :  { %v345_v6 = vand.u32 1, %v343_v4  ;;  %v346_v7 = vand.u32 1, %v344_v5  ;;  %v317_v18 = vsel %vm304_vm14, %v314_v12, %v316_v13  ;;  %v318_v19 = vsel %vm304_vm14, %v316_v13, %v314_v12 }
 0x565   :  { %v319_v22 = vsel %vm307_vm1, %v317_v18, %v270_v46  ;;  %v320_v23 = vsel %vm816_vm2, %v318_v19, %v271_v48 }
 0x566   :  { %v347_v10 = vmul.u32 %v345_v6, %v341_v8  ;;  %v348_v11 = vmul.u32 %v346_v7, %v342_v9 }
 0x567   :  { %v322_v20 = vpop.permute.xlu0 %321  ;;  %v324_v21 = vpop.permute.xlu1 %323 }
 0x568   :  { %349 = vrot.lane.b32.xlu0 %v347_v10, %s636_s29  ;;  %v386_v14 = vsub.s32 1, %v347_v10  ;;  %351 = vrot.lane.b32.xlu1 %v348_v11, %s636_s29  ;;  %v387_v15 = vsub.s32 1, %v348_v11  ;;  %v325_v24 = vsel %vm304_vm14, %v322_v20, %v324_v21  ;;  %v326_v25 = vsel %vm304_vm14, %v324_v21, %v322_v20 }
 0x569   :  { %v327_v26 = vsel %vm307_vm1, %v325_v24, %v278_v51  ;;  %v328_v27 = vsel %vm816_vm2, %v326_v25, %v279_v52  ;;  %v638_v52 = vmov 127   ;;  %vm456_vm14 = vcmp.lt.s32.totalorder %v692_v47, 192 }
 0x56a   :  { %v388_v16 = vmul.u32 %v386_v14, %v341_v8  ;;  %v389_v17 = vmul.u32 %v387_v15, %v342_v9  ;;  %555 = vset.pattern.permute.xlu0 %v638_v52 }
 0x56c   :  { %378 = vrot.lane.b32.xlu0 %v335_v63, %s636_s29  ;;  %380 = vrot.lane.b32.xlu1 %v336_v2, %s636_s29 }
 0x570   :  { %362 = vrot.lane.b32.xlu0 %v319_v22, %s636_s29  ;;  %364 = vrot.lane.b32.xlu1 %v320_v23, %s636_s29 }
 0x574   :  { %370 = vrot.lane.b32.xlu0 %v327_v26, %s636_s29  ;;  %372 = vrot.lane.b32.xlu1 %v328_v27, %s636_s29 }
 0x5da   :  { %v350_v28 = vpop.permute.xlu0 %349  ;;  %v352_v29 = vpop.permute.xlu1 %351 }
 0x5db   :  { %v355_v30 = vsel %vm353_vm3, %v352_v29, %v350_v28  ;;  %v354_v31 = vsel %vm353_vm3, %v350_v28, %v352_v29 }
 0x5dc   :  { %vm357_vm5 = vcmp.eq.s32.totalorder %v355_v30, 1  ;;  %vm356_vm6 = vcmp.eq.s32.totalorder %v354_v31, 1 }
 0x5dd   :  { %vm850_vm7 = vmand %vm357_vm5, %vm359_vm4  ;;  %v390_v41 = vsel %vm356_vm6, 1, %v388_v16 }
 0x5de   :  { %v379_v32 = vpop.permute.xlu0 %378  ;;  %v381_v33 = vpop.permute.xlu1 %380  ;;  %v391_v42 = vsel %vm850_vm7, 1, %v389_v17 }
 0x5df   :  { %v382_v1 = vsel %vm353_vm3, %v379_v32, %v381_v33  ;;  %v383_v34 = vsel %vm353_vm3, %v381_v33, %v379_v32 }
 0x5e0   :  { %v384_v35 = vsel %vm356_vm6, %v382_v1, %v335_v63  ;;  %v385_v36 = vsel %vm850_vm7, %v383_v34, %v336_v2 }
 0x5e1   :  { %v392_v37 = vshra.s32 %v384_v35, 5  ;;  %v393_v38 = vshra.s32 %v385_v36, 5 }
 0x5e2   :  { %v363_v45 = vpop.permute.xlu0 %362  ;;  %v365_v46 = vpop.permute.xlu1 %364 }
 0x5e3   :  { %v394_v39 = vand.u32 1, %v392_v37  ;;  %v395_v40 = vand.u32 1, %v393_v38  ;;  %v366_v53 = vsel %vm353_vm3, %v363_v45, %v365_v46  ;;  %v367_v54 = vsel %vm353_vm3, %v365_v46, %v363_v45 }
 0x5e4   :  { %v368_v58 = vsel %vm356_vm6, %v366_v53, %v319_v22  ;;  %v369_v59 = vsel %vm850_vm7, %v367_v54, %v320_v23 }
 0x5e5   :  { %v396_v43 = vmul.u32 %v394_v39, %v390_v41  ;;  %v397_v44 = vmul.u32 %v395_v40, %v391_v42 }
 0x5e6   :  { %v371_v55 = vpop.permute.xlu0 %370  ;;  %v373_v57 = vpop.permute.xlu1 %372 }
 0x5e7   :  { %398 = vrot.lane.b32.xlu0 %v396_v43, %s637_s30  ;;  %v435_v48 = vsub.s32 1, %v396_v43  ;;  %400 = vrot.lane.b32.xlu1 %v397_v44, %s637_s30  ;;  %v436_v49 = vsub.s32 1, %v397_v44  ;;  %v374_v60 = vsel %vm353_vm3, %v371_v55, %v373_v57  ;;  %v375_v61 = vsel %vm353_vm3, %v373_v57, %v371_v55 }
 0x5e8   :  { %v376_v62 = vsel %vm356_vm6, %v374_v60, %v327_v26  ;;  %v377_v63 = vsel %vm850_vm7, %v375_v61, %v328_v27 }
 0x5e9   :  { %v437_v50 = vmul.u32 %v435_v48, %v390_v41  ;;  %v438_v51 = vmul.u32 %v436_v49, %v391_v42 }
 0x5eb   :  { %427 = vrot.lane.b32.xlu0 %v384_v35, %s637_s30  ;;  %429 = vrot.lane.b32.xlu1 %v385_v36, %s637_s30 }
 0x5ef   :  { %411 = vrot.lane.b32.xlu0 %v368_v58, %s637_s30  ;;  %413 = vrot.lane.b32.xlu1 %v369_v59, %s637_s30 }
 0x5f3   :  { %419 = vrot.lane.b32.xlu0 %v376_v62, %s637_s30  ;;  %421 = vrot.lane.b32.xlu1 %v377_v63, %s637_s30 }
 0x659   :  { %v399_v2 = vpop.permute.xlu0 %398  ;;  %v401_v4 = vpop.permute.xlu1 %400 }
 0x65a   :  { %v404_v5 = vsel %vm402_vm8, %v401_v4, %v399_v2  ;;  %v403_v6 = vsel %vm402_vm8, %v399_v2, %v401_v4 }
 0x65b   :  { %vm406_vm10 = vcmp.eq.s32.totalorder %v404_v5, 1  ;;  %vm405_vm11 = vcmp.eq.s32.totalorder %v403_v6, 1 }
 0x65c   :  { %vm884_vm13 = vmand %vm406_vm10, %vm408_vm9  ;;  %v439_v20 = vsel %vm405_vm11, 1, %v437_v50 }
 0x65d   :  { %v428_v7 = vpop.permute.xlu0 %427  ;;  %v430_v8 = vpop.permute.xlu1 %429  ;;  %v440_v21 = vsel %vm884_vm13, 1, %v438_v51 }
 0x65e   :  { %v431_v10 = vsel %vm402_vm8, %v428_v7, %v430_v8  ;;  %v432_v11 = vsel %vm402_vm8, %v430_v8, %v428_v7 }
 0x65f   :  { %v434_v12 = vsel %vm884_vm13, %v432_v11, %v385_v36  ;;  %v433_v13 = vsel %vm405_vm11, %v431_v10, %v384_v35 }
 0x660   :  { %477 = vrot.lane.b32.xlu1 %v434_v12, %s631_s24  ;;  %v442_v14 = vshra.s32 %v434_v12, 6  ;;  %475 = vrot.lane.b32.xlu0 %v433_v13, %s631_s24  ;;  %v441_v15 = vshra.s32 %v433_v13, 6 }
 0x661   :  { %v412_v16 = vpop.permute.xlu0 %411  ;;  %v414_v17 = vpop.permute.xlu1 %413 }
 0x662   :  { %v444_v18 = vand.u32 1, %v442_v14  ;;  %v443_v19 = vand.u32 1, %v441_v15  ;;  %v415_v24 = vsel %vm402_vm8, %v412_v16, %v414_v17  ;;  %v416_v30 = vsel %vm402_vm8, %v414_v17, %v412_v16 }
 0x663   :  { %v417_v29 = vsel %vm405_vm11, %v415_v24, %v368_v58  ;;  %v418_v33 = vsel %vm884_vm13, %v416_v30, %v369_v59 }
 0x664   :  { %v445_v22 = vmul.u32 %v443_v19, %v439_v20  ;;  %v446_v23 = vmul.u32 %v444_v18, %v440_v21 }
 0x665   :  { %v420_v26 = vpop.permute.xlu0 %419  ;;  %v422_v27 = vpop.permute.xlu1 %421 }
 0x666   :  { %447 = vrot.lane.b32.xlu0 %v445_v22, %s631_s24  ;;  %449 = vrot.lane.b32.xlu1 %v446_v23, %s631_s24  ;;  %v484_v25 = vsub.s32 1, %v446_v23  ;;  %v423_v31 = vsel %vm402_vm8, %v420_v26, %v422_v27  ;;  %v424_v0 = vsel %vm402_vm8, %v422_v27, %v420_v26 }
 0x667   :  { %v425_v32 = vsel %vm405_vm11, %v423_v31, %v376_v62  ;;  %v426_v1 = vsel %vm884_vm13, %v424_v0, %v377_v63 }
 0x668   :  { %v486_v28 = vmul.u32 %v484_v25, %v440_v21 }
 0x66a   :  { %506 = vperm.xlu0 %555, %v701_v56   ;;  %459 = vrot.lane.b32.xlu1 %v417_v29, %s631_s24 }
 0x66e   :  { %467 = vrot.lane.b32.xlu0 %v425_v32, %s631_s24  ;;  %461 = vrot.lane.b32.xlu1 %v418_v33, %s631_s24 }
 0x672   :  { %469 = vrot.lane.b32.xlu1 %v426_v1, %s631_s24 }
 0x6d2   :  { %v476_v56 = vpop.permute.xlu0 %475  ;;  %v478_v34 = vpop.permute.xlu1 %477 }
 0x6d3   :  { %v480_v38 = vsel %vm125_vm12, %v478_v34, %v476_v56 }
 0x6d8   :  { %v448_v35 = vpop.permute.xlu0 %447  ;;  %v450_v36 = vpop.permute.xlu1 %449 }
 0x6d9   :  { %v452_v37 = vsel %vm125_vm12, %v450_v36, %v448_v35  ;;  %v451_v43 = vsel %vm125_vm12, %v448_v35, %v450_v36 }
 0x6da   :  { %vm454_vm15 = vcmp.eq.s32.totalorder %v452_v37, 1  ;;  %vm453_vm1 = vcmp.eq.s32.totalorder %v451_v43, 1 }
 0x6db   :  { %vm926_vm0 = vmand %vm454_vm15, %vm456_vm14 }
 0x6dc   :  { %v482_v40 = vsel %vm926_vm0, %v480_v38, %v434_v12  ;;  %v460_v41 = vpop.permute.xlu1 %459  ;;  %v488_v45 = vsel %vm926_vm0, 1, %v486_v28 }
 0x6dd   :  { %v490_v42 = vshra.s32 %v482_v40, 7 }
 0x6df   :  { %v492_v44 = vand.u32 1, %v490_v42 }
 0x6e0   :  { %v462_v46 = vpop.permute.xlu1 %461 }
 0x6e1   :  { %v463_v48 = vsel %vm125_vm12, %v460_v41, %v462_v46  ;;  %v464_v49 = vsel %vm125_vm12, %v462_v46, %v460_v41  ;;  %v494_v50 = vmul.u32 %v492_v44, %v488_v45 }
 0x6e2   :  { %v465_v51 = vsel %vm453_vm1, %v463_v48, %v417_v29  ;;  %v466_v52 = vsel %vm926_vm0, %v464_v49, %v418_v33 }
 0x6e3   :  { %vm495_vm2 = vcmp.eq.s32.totalorder %v494_v50, 1 }
 0x6e4   :  { %v501_v54 = vsel %vm495_vm2, %v466_v52, %v465_v51  ;;  %v470_v58 = vpop.permute.xlu1 %469 }
 0x6e5   :  { %v507_v53 = vpop.permute.xlu0 %506 }
 0x6e6   :  { %vm508_vm3 = vcmp.lt.s32.totalorder %v670_v3, %v507_v53  ;;  %vm509_vm4 = vcmp.lt.s32.totalorder %v692_v47, %v507_v53 }
 0x6e7   :  { %v510_v55 = vsel %vm508_vm3, %v501_v54, 4294967295  ;;  %v511_v57 = vsel %vm509_vm4, %v466_v52, 4294967295 }
 0x6e8   :  { %512 = vst [vmem:[#allocation7] sm:$0xff] %v510_v55  ;;  %513 = vst [vmem:[#allocation7 + $0x8] sm:$0xff] %v511_v57 }
 0x6e9   :  { %v468_v59 = vpop.permute.xlu0 %467 }
 0x6ea   :  { %v471_v60 = vsel %vm125_vm12, %v468_v59, %v470_v58  ;;  %v472_v61 = vsel %vm125_vm12, %v470_v58, %v468_v59 }
 0x6eb   :  { %v473_v62 = vsel %vm453_vm1, %v471_v60, %v425_v32  ;;  %v474_v47 = vsel %vm926_vm0, %v472_v61, %v426_v1 }
 0x6ec   :  { %v503_v63 = vsel %vm495_vm2, %v474_v47, %v473_v62  ;;  %v515_v2 = vsel %vm509_vm4, %v474_v47, 4294967295 }
 0x6ed   :  { %v514_v4 = vsel %vm508_vm3, %v503_v63, 4294967295  ;;  %518 = vst [vmem:[#allocation7 + $0x18] sm:$0xff] %v515_v2 }
 0x6ee   :  { %517 = vst [vmem:[#allocation7 + $0x10] sm:$0xff] %v514_v4 }
 0x6ef   :  { %607 = shalt.err (!%p604_p0)
}
 0x6f0   :  { %530 = dma.vmem_to_hbm [thread:$0]  %s525_s4, 512, %s966_s2, [#allocation4], %s624_s17, %s624_s17, %s625_s18  }
 0x6f1   :  { %620 = dma.done.wait [#allocation4], 512  }
 0x6f2   :  { %621 = vsyncadd [#allocation4], 4294966784 }
 0x6f3   :  { %534 = vsyncpa [#allocation3], 1 }
 0x6f4   :  { %535 = vsyncpa [#allocation6], 1 }
 0x6f5   :  { %536 = vsyncpa [#allocation4], 1 }

</bundles_post_ra>
